<compile_context>
chip_gen: v5e
topology: v5e:2x2
jax: 0.10.0
libtpu: 0.0.40
codegen_flags: <defaults>
</compile_context>

<pallas_src>
import functools

import jax
import jax.numpy as jnp
from jax.experimental import pallas as pl
from jax.experimental.pallas import tpu as pltpu

# Fused state layout: f32[1, 8]
#   lanes 0..3 -> x (2,2) row-major
#   lanes 4..5 -> kw_x (1,2)
#   lanes 6..7 -> padding (never read)
_STATE_SHAPE = (1, 8)
_STATE_DTYPE = jnp.float32


def _add_one_kernel(state_ref, out_ref):
    # x.add_(1); kw_x.add_(1) -- fused into one elementwise add on the
    # lane-contiguous state slab (padding lanes also get +1; never read).
    out_ref[...] = state_ref[...] + jnp.float32(1.0)


@functools.partial(jax.jit, donate_argnums=(0,))
def _step(state):
    """One forward() of ModuleWithDefaultTensorArgsMethod on the fused state."""
    new_state = pl.pallas_call(
        _add_one_kernel,
        out_shape=jax.ShapeDtypeStruct(_STATE_SHAPE, _STATE_DTYPE),
        in_specs=[pl.BlockSpec(memory_space=pltpu.MemorySpace.VMEM)],
        out_specs=pl.BlockSpec(memory_space=pltpu.MemorySpace.VMEM),
        # Mimic the in-place .add_(1) on the default tensors (real reuse
        # because the caller donates `state`).
        input_output_aliases={0: 0},
    )(state)
    x = new_state[0, :4].reshape(2, 2)
    kw_x = new_state[0, 4:6].reshape(1, 2)
    return new_state, x, kw_x


class WrapperModule:
    """JAX/Pallas mirror of the PyTorch WrapperModule.

    The inner module's default tensor args are module-level state mutated
    "in-place" on every call (matching PyTorch's default-arg caching).
    """

    def __init__(self):
        # Default tensor args, created once (like Python default args),
        # stored fused in one lane-contiguous buffer.
        self._state = jnp.zeros(_STATE_SHAPE, dtype=_STATE_DTYPE)

    def __call__(self):
        new_state, x, kw_x = _step(self._state)
        # Persist the in-place mutation of the default args.
        self._state = new_state
        return x, kw_x


if __name__ == "__main__":
    # forward() takes no inputs; PRNGKey kept for determinism convention.
    _ = jax.random.PRNGKey(0)

    mod = WrapperModule()
    x, kw_x = mod()
    jax.block_until_ready((x, kw_x))

    # First call: all-ones outputs, matching PyTorch semantics.
    assert x.shape == (2, 2) and kw_x.shape == (1, 2)
    assert x.dtype == jnp.float32 and kw_x.dtype == jnp.float32
    assert bool(jnp.all(x == 1.0)) and bool(jnp.all(kw_x == 1.0))

    # Second call mutates the cached default tensors again (-> all twos).
    x2, kw_x2 = mod()
    jax.block_until_ready((x2, kw_x2))
    assert bool(jnp.all(x2 == 2.0)) and bool(jnp.all(kw_x2 == 2.0))

    print("KERNEL_OK")
</pallas_src>

<mosaic_0001>
module attributes {stable_mosaic.version = 11 : i64} {
  func.func @_add_one_kernel(%arg0: memref<1x8xf32, #tpu.memory_space<vmem>>, %arg1: memref<1x8xf32, #tpu.memory_space<vmem>>) attributes {dimension_semantics = [], scalar_prefetch = 0 : i64, scratch_operands = 0 : i64, tpu.core_type = #tpu.core_type<tc>} {
    %c0 = arith.constant 0 : index
    %c0_0 = arith.constant 0 : index
    %0 = vector.load %arg0[%c0, %c0_0] : memref<1x8xf32, #tpu.memory_space<vmem>>, vector<1x8xf32>
    %cst = arith.constant 1.000000e+00 : f32
    %1 = vector.broadcast %cst : f32 to vector<1x8xf32>
    %2 = arith.addf %0, %1 : vector<1x8xf32>
    %c0_1 = arith.constant 0 : index
    %c0_2 = arith.constant 0 : index
    %3 = vector.load %arg1[%c0_1, %c0_2] : memref<1x8xf32, #tpu.memory_space<vmem>>, vector<1x8xf32>
    tpu.vector_store %arg1[%c0_1, %c0_2], %2 {strides = array<i32>} : memref<1x8xf32, #tpu.memory_space<vmem>>, vector<1x8xf32>,
    return
  }
}

</mosaic_0001>

<bundles_post_ra>
// kernel: squeeze.1
= control target key start
LH: loop header
LB: loop body
LE: loop exit
PB: predicated region body
PF: predicated region fallthrough
CT: control target
= control target key end

     0   :  { %s80_s0 = inlined_call_operand.vmem [shape: f32[4], index: 0, kind: input, shape index: {}]   ;;  %s81_s1 = inlined_call_operand.hbm [shape: f32[2,2], index: 1, kind: output, shape index: {}]  }
   0x1   :  { %v5_v0 = vld [vmem:[%s80_s0] sm:$0x1] }
   0x2   :  { %2 = vsyncpa [#allocation1], 0  ;;  %6 = vst [vmem:[#allocation3] sm:$0x1] %v5_v0  ;;  %vm8_vm0 = vcmask 15360   ;;  %s62_s0 = smov 126  }
   0x3   :  { %s63_s8 = smov [#allocation0]   ;;  %s27_s1 = sshll.u32 %s81_s1, 4  ;;  %s28_s1 = int_to_ptr.hbm [resolvable:$true] %s27_s1 }
   0x4   :  { %s25_s9 = sshll.u32 %s63_s8, 4  ;;  %s26_s9 = int_to_ptr.vmem [resolvable:$true] %s25_s9 }
   0x9   :  { %v10_v1 = vld [vmem:[#allocation3] sm:$0x1]  }
   0xa   :  { %v7_v2 = vld [vmem:[#allocation3] sm:$0x1]   ;;  %11 = vrot.lane.b32.xlu0 %v10_v1, %s62_s0 }
   0xb   :  { %9 = vst.msk [vmem:[#allocation2] sm:$0x1] %vm8_vm0, %v7_v2  }
  0x7c   :  { %v12_v3 = vpop.permute.xlu0 %11  }
  0x7d   :  { %15 = vst.msk [vmem:[#allocation2 + $0x1] sm:$0x1] %vm8_vm0, %v12_v3  }
  0x84   :  { %v18_v4 = vld [vmem:[#allocation2] sm:$0x3] }
  0x85   :  { %21 = vst [vmem:[#allocation0] sm:$0x3] %v18_v4 }
  0x86   :  { %30 = dma.vmem_to_hbm [thread:$0]  %s26_s9, 32, %s28_s1, [#allocation1]  }
  0x87   :  { %60 = dma.done.wait [#allocation1], 32  }
  0x88   :  { %61 = vsyncadd [#allocation1], 4294967264 }
  0x89   :  { %33 = vsyncpa [#allocation1], 1 }

// kernel: _step.1
= control target key start
LH: loop header
LB: loop body
LE: loop exit
PB: predicated region body
PF: predicated region fallthrough
CT: control target
= control target key end

     0   :  { %6 = vsyncpa [#allocation3], 0  ;;  %s116_s0 = inlined_call_operand.hbm [shape: f32[1,8], index: 0, kind: input, shape index: {}, may-alias: {0,1}]   ;;  %s117_s1 = inlined_call_operand.hbm [shape: f32[1,8], index: 1, kind: output, shape index: {}, may-alias: {0,1}]  }
   0x1   :  { %7 = vsyncpa [#allocation4], 0  ;;  %s13_s8 = sshll.u32 %s116_s0, 4  ;;  %s98_s9 = smov [#allocation2]   ;;  %s14_s8 = int_to_ptr.hbm [resolvable:$true] %s13_s8 }
   0x2   :  { %s15_s10 = sshll.u32 %s98_s9, 4  ;;  %s16_s10 = int_to_ptr.vmem [resolvable:$true] %s15_s10 }
   0x3   :  { %18 = dma.hbm_to_vmem [thread:$0]  %s14_s8, 16, %s16_s10, [#allocation3]  }
   0x4   :  { %94 = dma.done.wait [#allocation3], 16  }
   0x5   :  { %95 = vsyncadd [#allocation3], 4294967280  ;;  %s99_s11 = smov [#allocation5]   ;;  %s34_s15 = sshll.u32 %s117_s1, 4  ;;  %v23_v0 = vld [vmem:[#allocation2] sm:$0x1]  ;;  %s35_s15 = int_to_ptr.hbm [resolvable:$true] %s34_s15 }
   0x6   :  { %s32_s12 = sshll.u32 %s99_s11, 4  ;;  %vm25_vm0 = vcmask 57344   ;;  %v24_v1 = vadd.f32 1.0, %v23_v0  ;;  %s33_s12 = int_to_ptr.vmem [resolvable:$true] %s32_s12 }
   0x8   :  { %26 = vst.msk [vmem:[#allocation5] sm:$0x1] %vm25_vm0, %v24_v1 }
   0x9   :  { %37 = dma.vmem_to_hbm [thread:$0]  %s33_s12, 16, %s35_s15, [#allocation4]  }
   0xa   :  { %96 = dma.done.wait [#allocation4], 16  }
   0xb   :  { %97 = vsyncadd [#allocation4], 4294967280 }
   0xc   :  { %42 = vsyncpa [#allocation3], 1 }
   0xd   :  { %43 = vsyncpa [#allocation4], 1 }

</bundles_post_ra>
